<compile_context>
chip_gen: v5e
topology: v5e:2x2
jax: 0.10.0
libtpu: 0.0.40
codegen_flags: <defaults>
</compile_context>

<pallas_src>
import jax
import jax.numpy as jnp
from jax import lax
from jax.experimental import pallas as pl
from jax.experimental.pallas import tpu as pltpu
import numpy as np


def tagger_kernel(g_ref, w_ref, b_ref, probs_ref, idx_ref):
    F, TB = g_ref.shape            # num categorical features, batch tile (lanes)
    Cp, Dp = w_ref.shape           # padded (128-aligned) class dim, padded sparse dim
    C_real = probs_ref.shape[0]    # real number of classes written back

    g = g_ref[...]                 # [F, TB] int32: global one-hot row index per feature

    # dense2sparse (data_encoder.transform) without a [TB, F, D] blowup:
    # per-feature one-hot masks accumulated into one [Dp, TB] multi-hot buffer
    # (features hit disjoint row ranges because offsets were folded in on host).
    iota_d = lax.broadcasted_iota(jnp.int32, (Dp, TB), 0)
    sparse_t = (iota_d == g[0:1, :]).astype(jnp.bfloat16)
    for f in range(1, F):          # F is small & static -> fully unrolled
        sparse_t = sparse_t + (iota_d == g[f:f + 1, :]).astype(jnp.bfloat16)
    # TODO(synk): at production D (~10k) replace one-hot + matmul with a
    # gather-sum of W columns (logits = b + sum_f W[:, g[f]]), or at least
    # restrict each feature's compare/add to its static 128-rounded row range.

    # Minimal concrete `forward`: linear layer over sparse features -> logits.
    # TODO(synk): TaggerBase.forward is abstract; subclasses define the real model.
    logits = jnp.dot(w_ref[...], sparse_t,
                     preferred_element_type=jnp.float32) + b_ref[...]   # [Cp, TB] f32

    # predict_probs_from_words: numerically stable softmax over the class axis.
    # Padded class rows carry a huge-negative bias -> exp underflows to 0.
    m = jnp.max(logits, axis=0, keepdims=True)          # [1, TB]
    e = jnp.exp(logits - m)
    s = jnp.sum(e, axis=0, keepdims=True)
    probs_ref[...] = (e / s)[:C_real, :]                 # exact divide (calibrated)

    # predict_idx_from_words: argmax (first maximal index, matches torch/np).
    iota_c = lax.broadcasted_iota(jnp.int32, (Cp, TB), 0)
    idx_ref[...] = jnp.min(jnp.where(logits == m, iota_c, Cp),
                           axis=0, keepdims=True)        # [1, TB] int32, lane-dense


def _ceil_to(x, m):
    return ((x + m - 1) // m) * m


def tagger_predict(x_dense, offsets, w, b, *, tb=128):
    """Fused dense2sparse + linear forward + softmax + argmax.

    Returns (probs [B, C] f32, pred_idx [B] int32).
    """
    B, F = x_dense.shape
    D, C = w.shape

    # Lane-dense batch tiles; don't over-pad tiny batches.  For large B on v7x,
    # pick tb so the grid length stays >= 2 (megacore splits the parallel axis).
    tb = max(128, (tb // 128) * 128)
    tb = min(tb, _ceil_to(B, 128))
    B_pad = _ceil_to(B, tb)
    D_pad = _ceil_to(D, 8)         # sublane-align the sparse dim
    C_pad = _ceil_to(C, 128)       # lane/MXU-align the class dim (contraction M)

    # Fold data_encoder column offsets into the categorical indices on the host
    # (free) and pad the batch so every grid step sees a full (F, tb) tile.
    g_t = (x_dense + offsets).astype(jnp.int32).T                    # [F, B]
    g_t = jnp.pad(g_t, ((0, 0), (0, B_pad - B)))                     # [F, B_pad]

    # Transposed weights: bf16 operands (MXU-native), f32 accumulate in-kernel.
    # Padded class rows / sparse cols are zero (never selected: g < D).
    w_t = jnp.pad(w.astype(jnp.float32).T,
                  ((0, C_pad - C), (0, D_pad - D))).astype(jnp.bfloat16)
    # Padded class rows get a dtype-derived huge-negative bias so they can never
    # win softmax/argmax (finfo.min/2 cannot overflow when m is subtracted).
    neg_fill = float(jnp.finfo(jnp.float32).min) / 2.0
    b_t = jnp.pad(b.astype(jnp.float32).reshape(C, 1),
                  ((0, C_pad - C), (0, 0)), constant_values=neg_fill)

    # TODO(synk): at production D on v7x (64 MiB VMEM, 32 MiB scoped default),
    # single-buffer the grid-constant W/bias specs (pipeline_mode=pl.Buffered(1))
    # and/or raise vmem_limit_bytes via pltpu.CompilerParams.
    probs_t, idx_row = pl.pallas_call(
        tagger_kernel,
        out_shape=(
            jax.ShapeDtypeStruct((C, B_pad), jnp.float32),   # softmax probs (real cols only)
            jax.ShapeDtypeStruct((1, B_pad), jnp.int32),     # predicted class idx
        ),
        grid=(B_pad // tb,),
        in_specs=[
            pl.BlockSpec((F, tb), lambda i: (0, i)),         # batch-tiled indices
            pl.BlockSpec((C_pad, D_pad), lambda i: (0, 0)),  # resident weights (bf16)
            pl.BlockSpec((C_pad, 1), lambda i: (0, 0)),      # resident bias (f32)
        ],
        out_specs=(
            pl.BlockSpec((C, tb), lambda i: (0, i)),
            pl.BlockSpec((1, tb), lambda i: (0, i)),
        ),
        compiler_params=pltpu.CompilerParams(
            dimension_semantics=("parallel",)),              # megacore-shardable batch axis
    )(g_t, w_t, b_t)

    return probs_t[:, :B].T, idx_row[0, :B]


if __name__ == "__main__":
    key = jax.random.PRNGKey(0)

    # Synthetic tabular tagger setup: 100 rows, 6 categorical features with the
    # per-feature cardinalities below, 2 output tags ('below $50K'/'above $50K').
    batch = 100
    cardinalities = np.array([3, 4, 2, 5, 3, 4], dtype=np.int32)
    num_features = cardinalities.shape[0]
    sparse_dim = int(cardinalities.sum())     # 21
    num_classes = 2

    offsets = jnp.asarray(
        np.concatenate([[0], np.cumsum(cardinalities)[:-1]]).astype(np.int32)
    ).reshape(1, num_features)

    kx, kw, kb = jax.random.split(key, 3)
    # Dense categorical inputs: each feature value in [0, cardinality_f)
    kcols = jax.random.split(kx, num_features)
    x_cols = [
        jax.random.randint(kcols[f], (batch, 1), 0, int(cardinalities[f]),
                           dtype=jnp.int32)
        for f in range(num_features)
    ]
    x_dense = jnp.concatenate(x_cols, axis=1)                     # [batch, num_features]

    # Deterministic linear-layer params (stand-in for the subclass forward)
    w = jax.random.normal(kw, (sparse_dim, num_classes), dtype=jnp.float32) * 0.1
    b = jax.random.normal(kb, (1, num_classes), dtype=jnp.float32) * 0.01

    probs, pred_idx = tagger_predict(x_dense, offsets, w, b, tb=128)
    jax.block_until_ready((probs, pred_idx))

    # Plain-numpy reference of the full pipeline (W quantized to bf16 exactly as
    # the kernel does; the one-hot operand is exact in bf16, accumulation is f32).
    g_np = np.asarray(x_dense) + np.asarray(offsets)
    sparse_ref = np.zeros((batch, sparse_dim), np.float32)
    for bi in range(batch):
        for f in range(num_features):
            sparse_ref[bi, g_np[bi, f]] += 1.0
    w_ref = np.asarray(w.astype(jnp.bfloat16).astype(jnp.float32))
    logits_ref = sparse_ref @ w_ref + np.asarray(b)
    probs_ref = np.exp(logits_ref - logits_ref.max(-1, keepdims=True))
    probs_ref = probs_ref / probs_ref.sum(-1, keepdims=True)
    idx_ref = logits_ref.argmax(-1)

    assert probs.shape == (batch, num_classes)
    assert pred_idx.shape == (batch,)
    assert np.allclose(np.asarray(probs), probs_ref, atol=1e-4)
    assert np.allclose(np.asarray(probs).sum(-1), 1.0, atol=1e-5)  # exact softmax divide
    assert np.array_equal(np.asarray(pred_idx), idx_ref)

    # saliency_map / impute_data / fit_imputation_models are sklearn-driven host
    # code; tag_seq_indexer.idx2items is a host-side dict lookup on pred_idx.
    print("KERNEL_OK")
</pallas_src>

<mosaic_0001>
module attributes {stable_mosaic.version = 11 : i64} {
  func.func @tagger_kernel(%arg0: i32, %arg1: memref<6x128xi32, #tpu.memory_space<vmem>>, %arg2: memref<128x24xbf16, #tpu.memory_space<vmem>>, %arg3: memref<128x1xf32, #tpu.memory_space<vmem>>, %arg4: memref<2x128xf32, #tpu.memory_space<vmem>>, %arg5: memref<1x128xi32, #tpu.memory_space<vmem>>) attributes {dimension_semantics = [#tpu.dimension_semantics<parallel>], iteration_bounds = array<i64: 1>, scalar_prefetch = 0 : i64, scratch_operands = 0 : i64, tpu.core_type = #tpu.core_type<tc>, window_params = [{transform_indices = @transform_0, window_bounds = array<i64: 6, 128>}, {pipeline_mode = #tpu.pipeline_mode<synchronous>, transform_indices = @transform_1, window_bounds = array<i64: 128, 24>}, {pipeline_mode = #tpu.pipeline_mode<synchronous>, transform_indices = @transform_2, window_bounds = array<i64: 128, 1>}, {transform_indices = @transform_3, window_bounds = array<i64: 2, 128>}, {transform_indices = @transform_4, window_bounds = array<i64: 1, 128>}]} {
    %c0 = arith.constant 0 : index
    %c0_0 = arith.constant 0 : index
    %0 = vector.load %arg1[%c0, %c0_0] : memref<6x128xi32, #tpu.memory_space<vmem>>, vector<6x128xi32>
    %1 = tpu.iota {dimensions = array<i32: 0>} : vector<24x128xi32>
    %2 = vector.extract_strided_slice %0 {offsets = [0, 0], sizes = [1, 128], strides = [1, 1]} : vector<6x128xi32> to vector<1x128xi32>
    %3 = vector.broadcast %2 : vector<1x128xi32> to vector<24x128xi32>
    %4 = arith.cmpi eq, %1, %3 : vector<24x128xi32>
    %5 = arith.extui %4 : vector<24x128xi1> to vector<24x128xi32>
    %6 = arith.sitofp %5 : vector<24x128xi32> to vector<24x128xf32>
    %7 = arith.truncf %6 : vector<24x128xf32> to vector<24x128xbf16>
    %8 = vector.extract_strided_slice %0 {offsets = [1, 0], sizes = [1, 128], strides = [1, 1]} : vector<6x128xi32> to vector<1x128xi32>
    %9 = vector.broadcast %8 : vector<1x128xi32> to vector<24x128xi32>
    %10 = arith.cmpi eq, %1, %9 : vector<24x128xi32>
    %11 = arith.extui %10 : vector<24x128xi1> to vector<24x128xi32>
    %12 = arith.sitofp %11 : vector<24x128xi32> to vector<24x128xf32>
    %13 = arith.truncf %12 : vector<24x128xf32> to vector<24x128xbf16>
    %14 = arith.addf %7, %13 : vector<24x128xbf16>
    %15 = vector.extract_strided_slice %0 {offsets = [2, 0], sizes = [1, 128], strides = [1, 1]} : vector<6x128xi32> to vector<1x128xi32>
    %16 = vector.broadcast %15 : vector<1x128xi32> to vector<24x128xi32>
    %17 = arith.cmpi eq, %1, %16 : vector<24x128xi32>
    %18 = arith.extui %17 : vector<24x128xi1> to vector<24x128xi32>
    %19 = arith.sitofp %18 : vector<24x128xi32> to vector<24x128xf32>
    %20 = arith.truncf %19 : vector<24x128xf32> to vector<24x128xbf16>
    %21 = arith.addf %14, %20 : vector<24x128xbf16>
    %22 = vector.extract_strided_slice %0 {offsets = [3, 0], sizes = [1, 128], strides = [1, 1]} : vector<6x128xi32> to vector<1x128xi32>
    %23 = vector.broadcast %22 : vector<1x128xi32> to vector<24x128xi32>
    %24 = arith.cmpi eq, %1, %23 : vector<24x128xi32>
    %25 = arith.extui %24 : vector<24x128xi1> to vector<24x128xi32>
    %26 = arith.sitofp %25 : vector<24x128xi32> to vector<24x128xf32>
    %27 = arith.truncf %26 : vector<24x128xf32> to vector<24x128xbf16>
    %28 = arith.addf %21, %27 : vector<24x128xbf16>
    %29 = vector.extract_strided_slice %0 {offsets = [4, 0], sizes = [1, 128], strides = [1, 1]} : vector<6x128xi32> to vector<1x128xi32>
    %30 = vector.broadcast %29 : vector<1x128xi32> to vector<24x128xi32>
    %31 = arith.cmpi eq, %1, %30 : vector<24x128xi32>
    %32 = arith.extui %31 : vector<24x128xi1> to vector<24x128xi32>
    %33 = arith.sitofp %32 : vector<24x128xi32> to vector<24x128xf32>
    %34 = arith.truncf %33 : vector<24x128xf32> to vector<24x128xbf16>
    %35 = arith.addf %28, %34 : vector<24x128xbf16>
    %36 = vector.extract_strided_slice %0 {offsets = [5, 0], sizes = [1, 128], strides = [1, 1]} : vector<6x128xi32> to vector<1x128xi32>
    %37 = vector.broadcast %36 : vector<1x128xi32> to vector<24x128xi32>
    %38 = arith.cmpi eq, %1, %37 : vector<24x128xi32>
    %39 = arith.extui %38 : vector<24x128xi1> to vector<24x128xi32>
    %40 = arith.sitofp %39 : vector<24x128xi32> to vector<24x128xf32>
    %41 = arith.truncf %40 : vector<24x128xf32> to vector<24x128xbf16>
    %42 = arith.addf %35, %41 : vector<24x128xbf16>
    %c0_1 = arith.constant 0 : index
    %c0_2 = arith.constant 0 : index
    %43 = vector.load %arg2[%c0_1, %c0_2] : memref<128x24xbf16, #tpu.memory_space<vmem>>, vector<128x24xbf16>
    %cst = arith.constant dense<0.000000e+00> : vector<128x128xf32>
    %44 = tpu.matmul %43, %42, %cst {dimension_numbers = #tpu.dot_dimension_numbers<[1], [0], [0], [1], [0, 0, 1, 1], [], []>} : vector<128x24xbf16>, vector<24x128xbf16>, vector<128x128xf32> -> vector<128x128xf32>
    %c0_3 = arith.constant 0 : index
    %c0_4 = arith.constant 0 : index
    %45 = vector.load %arg3[%c0_3, %c0_4] : memref<128x1xf32, #tpu.memory_space<vmem>>, vector<128x1xf32>
    %46 = vector.broadcast %45 : vector<128x1xf32> to vector<128x128xf32>
    %47 = arith.addf %44, %46 : vector<128x128xf32>
    %cst_5 = arith.constant dense<0xFF800000> : vector<128xf32>
    %48 = vector.multi_reduction <maximumf>, %47, %cst_5 [0] : vector<128x128xf32> to vector<128xf32>
    %49 = vector.shape_cast %48 : vector<128xf32> to vector<1x128xf32>
    %50 = vector.broadcast %49 : vector<1x128xf32> to vector<128x128xf32>
    %51 = arith.subf %47, %50 : vector<128x128xf32>
    %52 = math.exp %51 : vector<128x128xf32>
    %cst_6 = arith.constant dense<0.000000e+00> : vector<128xf32>
    %53 = vector.multi_reduction <add>, %52, %cst_6 [0] : vector<128x128xf32> to vector<128xf32>
    %54 = vector.shape_cast %53 : vector<128xf32> to vector<1x128xf32>
    %55 = vector.broadcast %54 : vector<1x128xf32> to vector<128x128xf32>
    %56 = arith.divf %52, %55 : vector<128x128xf32>
    %57 = vector.extract_strided_slice %56 {offsets = [0, 0], sizes = [2, 128], strides = [1, 1]} : vector<128x128xf32> to vector<2x128xf32>
    %c0_7 = arith.constant 0 : index
    %c0_8 = arith.constant 0 : index
    %58 = vector.load %arg4[%c0_7, %c0_8] : memref<2x128xf32, #tpu.memory_space<vmem>>, vector<2x128xf32>
    tpu.vector_store %arg4[%c0_7, %c0_8], %57 {strides = array<i32>} : memref<2x128xf32, #tpu.memory_space<vmem>>, vector<2x128xf32>,
    %59 = tpu.iota {dimensions = array<i32: 0>} : vector<128x128xi32>
    %60 = vector.broadcast %49 : vector<1x128xf32> to vector<128x128xf32>
    %61 = arith.cmpf oeq, %47, %60 : vector<128x128xf32>
    %c128_i32 = arith.constant 128 : i32
    %62 = vector.broadcast %c128_i32 : i32 to vector<128x128xi32>
    %63 = arith.select %61, %59, %62 : vector<128x128xi1>, vector<128x128xi32>
    %cst_9 = arith.constant dense<2147483647> : vector<128xi32>
    %64 = vector.multi_reduction <minsi>, %63, %cst_9 [0] : vector<128x128xi32> to vector<128xi32>
    %65 = vector.shape_cast %64 : vector<128xi32> to vector<1x128xi32>
    %c0_10 = arith.constant 0 : index
    %c0_11 = arith.constant 0 : index
    %66 = vector.load %arg5[%c0_10, %c0_11] : memref<1x128xi32, #tpu.memory_space<vmem>>, vector<1x128xi32>
    tpu.vector_store %arg5[%c0_10, %c0_11], %65 {strides = array<i32>} : memref<1x128xi32, #tpu.memory_space<vmem>>, vector<1x128xi32>,
    return
  }
  func.func @transform_0(%arg0: i32) -> (i32, i32) {
    %c0_i32 = arith.constant 0 : i32
    %c0_i32_0 = arith.constant 0 : i32
    return %c0_i32, %arg0 : i32, i32
  }
  func.func @transform_1(%arg0: i32) -> (i32, i32) {
    %c0_i32 = arith.constant 0 : i32
    %c0_i32_0 = arith.constant 0 : i32
    %c0_i32_1 = arith.constant 0 : i32
    return %c0_i32, %c0_i32_0 : i32, i32
  }
  func.func @transform_2(%arg0: i32) -> (i32, i32) {
    %c0_i32 = arith.constant 0 : i32
    %c0_i32_0 = arith.constant 0 : i32
    %c0_i32_1 = arith.constant 0 : i32
    return %c0_i32, %c0_i32_0 : i32, i32
  }
  func.func @transform_3(%arg0: i32) -> (i32, i32) {
    %c0_i32 = arith.constant 0 : i32
    %c0_i32_0 = arith.constant 0 : i32
    return %c0_i32, %arg0 : i32, i32
  }
  func.func @transform_4(%arg0: i32) -> (i32, i32) {
    %c0_i32 = arith.constant 0 : i32
    %c0_i32_0 = arith.constant 0 : i32
    return %c0_i32, %arg0 : i32, i32
  }
}

</mosaic_0001>

<bundles_post_ra>
// kernel: tpu_custom_call.1
= control target key start
LH: loop header
LB: loop body
LE: loop exit
PB: predicated region body
PF: predicated region fallthrough
CT: control target
= control target key end

     0   :  { %10 = vsyncpa [#allocation3], 0  ;;  %v20_v2 = vlaneseq  ;;  %v779_v3 = vmov 0   ;;  %s1185_s0 = inlined_call_operand.vmem [shape: s32[6,128], index: 0, kind: input, shape index: {}]   ;;  %s1186_s1 = inlined_call_operand.vmem [shape: bf16[128,24], index: 1, kind: input, shape index: {}]   ;;  %s1187_s2 = inlined_call_operand.vmem [shape: f32[128,1], index: 2, kind: input, shape index: {}]   ;;  %s1188_s3 = inlined_call_operand.hbm [shape: f32[2,128], index: 3, kind: output, shape index: {0}]   ;;  %s1189_s4 = inlined_call_operand.hbm [shape: s32[1,128], index: 4, kind: output, shape index: {1}]  }
   0x1   :  { %v177_v0 = vld [vmem:[%s1187_s2] sm:$0xff]  ;;  %v179_v1 = vld [vmem:[%s1187_s2 + $0x10] sm:$0xff]  ;;  %690 = vset.pattern.permute.xlu0 %v779_v3  ;;  %691 = vset.pattern.permute.xlu1 %v779_v3 }
   0x2   :  { %195 = vperm.xlu0 %690, %v177_v0   ;;  %205 = vperm.xlu1 %691, %v179_v1   ;;  %v817_v4 = vld [vmem:[%s1185_s0] sm:$0x3f]  ;;  %v819_v5 = vshrl.u32 %v20_v2, 7 }
   0x3   :  { %11 = vsyncpa [#allocation5], 0  ;;  %v24_v6 = vperm.slane %v817_v4, 0  ;;  %v37_v7 = vperm.slane %v817_v4, 1  ;;  %692 = vset.pattern.permute.xlu2 %v779_v3  ;;  %v62_v9 = vperm.slane %v817_v4, 2  ;;  %v178_v11 = vld [vmem:[%s1187_s2 + $0x8] sm:$0xff] }
   0x4   :  { %v824_v8 = vadd.s32 16, %v819_v5  ;;  %v828_v10 = vadd.s32 8, %v819_v5  ;;  %v180_v12 = vld [vmem:[%s1187_s2 + $0x18] sm:$0xff]  ;;  %v780_v13 = vmov 0.0   ;;  %v87_v20 = vperm.slane %v817_v4, 3  ;;  %v181_v28 = vld [vmem:[%s1187_s2 + $0x20] sm:$0xff] }
   0x5   :  { %vm25_vm2 = vcmp.eq.s32.totalorder %v819_v5, %v24_v6  ;;  %vm38_vm3 = vcmp.eq.s32.totalorder %v819_v5, %v37_v7  ;;  %vm63_vm7 = vcmp.eq.s32.totalorder %v819_v5, %v62_v9  ;;  %215 = vperm.xlu2 %692, %v181_v28   ;;  %v183_v32 = vld [vmem:[%s1187_s2 + $0x30] sm:$0xff]  ;;  %v184_v33 = vld [vmem:[%s1187_s2 + $0x38] sm:$0xff]  ;;  %v112_v37 = vperm.slane %v817_v4, 4  ;;  %v182_v44 = vld [vmem:[%s1187_s2 + $0x28] sm:$0xff]  ;;  %s600_s13 = sshll.u32 %s1189_s4, 4  ;;  %s782_s4 = smov [#allocation2]   ;;  %s601_s13 = int_to_ptr.hbm [resolvable:$true] %s600_s13 }
   0x6   :  { %vm27_vm0 = vcmp.eq.s32.totalorder %v824_v8, %v24_v6  ;;  %vm40_vm1 = vcmp.eq.s32.totalorder %v824_v8, %v37_v7  ;;  %vm65_vm4 = vcmp.eq.s32.totalorder %v824_v8, %v62_v9  ;;  %vm26_vm5 = vcmp.eq.s32.totalorder %v828_v10, %v24_v6  ;;  %v186_v53 = vld [vmem:[%s1187_s2 + $0x48] sm:$0xff]  ;;  %v187_v56 = vld [vmem:[%s1187_s2 + $0x50] sm:$0xff]  ;;  %v185_v6 = vld [vmem:[%s1187_s2 + $0x40] sm:$0xff]  ;;  %s587_s14 = sshll.u32 %s782_s4, 4  ;;  %s589_s17 = sshll.u32 %s1188_s3, 4  ;;  %s588_s14 = int_to_ptr.vmem [resolvable:$true] %s587_s14  ;;  %s590_s17 = int_to_ptr.hbm [resolvable:$true] %s589_s17 }
   0x7   :  { %v616_v14 = vsel %vm27_vm0, 1.0, %v780_v13  ;;  %v619_v15 = vsel %vm40_vm1, 1.0, %v780_v13  ;;  %v614_v17 = vsel %vm25_vm2, 1.0, %v780_v13  ;;  %v615_v18 = vsel %vm26_vm5, 1.0, %v780_v13  ;;  %v192_v28 = vld [vmem:[%s1187_s2 + $0x78] sm:$0xff] }
   0x8   :  { %v58_v16 = vadd.f32 %v619_v15, %v616_v14  ;;  %vm39_vm6 = vcmp.eq.s32.totalorder %v828_v10, %v37_v7  ;;  %v617_v21 = vsel %vm38_vm3, 1.0, %v780_v13  ;;  %v622_v22 = vsel %vm65_vm4, 1.0, %v780_v13  ;;  %v190_v14 = vld [vmem:[%s1187_s2 + $0x68] sm:$0xff] }
   0x9   :  { %v618_v23 = vsel %vm39_vm6, 1.0, %v780_v13  ;;  %v56_v24 = vadd.f32 %v617_v21, %v614_v17  ;;  %vm64_vm8 = vcmp.eq.s32.totalorder %v828_v10, %v62_v9  ;;  %vm90_vm9 = vcmp.eq.s32.totalorder %v824_v8, %v87_v20 }
   0xa   :  { %200 = vperm.xlu0 %690, %v178_v11   ;;  %210 = vperm.xlu1 %691, %v180_v12   ;;  %v61_v19 = vpack.c.bf16 %v58_v16, %v58_v16  ;;  %v57_v26 = vadd.f32 %v618_v23, %v615_v18  ;;  %v620_v31 = vsel %vm63_vm7, 1.0, %v780_v13  ;;  %v621_v34 = vsel %vm64_vm8, 1.0, %v780_v13  ;;  %v189_v11 = vld [vmem:[%s1187_s2 + $0x60] sm:$0xff] }
   0xb   :  { %v59_v27 = vpack.c.bf16 %v56_v24, %v56_v24  ;;  %v625_v39 = vsel %vm90_vm9, 1.0, %v780_v13  ;;  %vm88_vm10 = vcmp.eq.s32.totalorder %v819_v5, %v87_v20  ;;  %vm89_vm11 = vcmp.eq.s32.totalorder %v828_v10, %v87_v20 }
   0xc   :  { %v77_v25 = vunpack.c.l.bf16 %v61_v19  ;;  %v60_v30 = vpack.c.bf16 %v57_v26, %v57_v26  ;;  %vm115_vm12 = vcmp.eq.s32.totalorder %v824_v8, %v112_v37  ;;  %v623_v47 = vsel %vm88_vm10, 1.0, %v780_v13 }
   0xd   :  { %v75_v35 = vunpack.c.l.bf16 %v59_v27  ;;  %v624_v48 = vsel %vm89_vm11, 1.0, %v780_v13  ;;  %v137_v51 = vperm.slane %v817_v4, 5  ;;  %220 = vperm.xlu2 %692, %v182_v44   ;;  %v628_v54 = vsel %vm115_vm12, 1.0, %v780_v13  ;;  %v674_v27 = vld [vmem:[%s1186_s1 + $0x10] sm:$0xff] }
   0xe   :  { %v83_v29 = vadd.f32 %v622_v22, %v77_v25  ;;  %v76_v38 = vunpack.c.l.bf16 %v60_v30  ;;  %vm113_vm13 = vcmp.eq.s32.totalorder %v819_v5, %v112_v37  ;;  %vm114_vm14 = vcmp.eq.s32.totalorder %v828_v10, %v112_v37  ;;  %v188_v25 = vld [vmem:[%s1187_s2 + $0x58] sm:$0xff]  ;;  %v678_v30 = vld [vmem:[%s1186_s1 + $0x30] sm:$0xff] }
   0xf   :  { %v81_v40 = vadd.f32 %v620_v31, %v75_v35  ;;  %vm140_vm15 = vcmp.eq.s32.totalorder %v824_v8, %v137_v51  ;;  %v626_v62 = vsel %vm113_vm13, 1.0, %v780_v13  ;;  %v627_v63 = vsel %vm114_vm14, 1.0, %v780_v13  ;;  %v191_v31 = vld [vmem:[%s1187_s2 + $0x70] sm:$0xff]  ;;  %v679_v35 = vld [vmem:[%s1186_s1 + $0x38] sm:$0xff] }
  0x10   :  { %v86_v36 = vpack.c.bf16 %v83_v29, %v83_v29  ;;  %v82_v42 = vadd.f32 %v621_v34, %v76_v38  ;;  %v631_v3 = vsel %vm140_vm15, 1.0, %v780_v13  ;;  %vm138_vm0 = vcmp.eq.s32.totalorder %v819_v5, %v137_v51  ;;  %v676_v29 = vld [vmem:[%s1186_s1 + $0x20] sm:$0xff]  ;;  %v677_v34 = vld [vmem:[%s1186_s1 + $0x28] sm:$0xff] }
  0x11   :  { %v84_v43 = vpack.c.bf16 %v81_v40, %v81_v40  ;;  %vm139_vm1 = vcmp.eq.s32.totalorder %v828_v10, %v137_v51  ;;  %v629_v17 = vsel %vm138_vm0, 1.0, %v780_v13  ;;  %vm338_vm2 = vcmask 1043456  }
  0x12   :  { %225 = vperm.xlu0 %690, %v183_v32   ;;  %v102_v41 = vunpack.c.l.bf16 %v86_v36  ;;  %230 = vperm.xlu1 %691, %v184_v33   ;;  %v85_v46 = vpack.c.bf16 %v82_v42, %v82_v42  ;;  %v630_v18 = vsel %vm139_vm1, 1.0, %v780_v13  ;;  %v672_v13 = vld [vmem:[%s1186_s1] sm:$0xff]  ;;  %vm313_vm3 = vcmask 195584   ;;  %v673_v32 = vld [vmem:[%s1186_s1 + $0x8] sm:$0xff]  ;;  %v675_v33 = vld [vmem:[%s1186_s1 + $0x18] sm:$0xff]  ;;  %s781_s1 = smov [#allocation4]  }
  0x13   :  { %v100_v49 = vunpack.c.l.bf16 %v84_v43  ;;  %s598_s2 = sshll.u32 %s781_s1, 4  ;;  %s599_s2 = int_to_ptr.vmem [resolvable:$true] %s598_s2 }
  0x14   :  { %v108_v45 = vadd.f32 %v625_v39, %v102_v41  ;;  %v101_v52 = vunpack.c.l.bf16 %v85_v46 }
  0x15   :  { %v106_v55 = vadd.f32 %v623_v47, %v100_v49  ;;  %235 = vperm.xlu2 %692, %v185_v6  }
  0x16   :  { %v111_v50 = vpack.c.bf16 %v108_v45, %v108_v45  ;;  %v107_v58 = vadd.f32 %v624_v48, %v101_v52 }
  0x17   :  { %v109_v59 = vpack.c.bf16 %v106_v55, %v106_v55 }
  0x18   :  { %v127_v57 = vunpack.c.l.bf16 %v111_v50  ;;  %v110_v61 = vpack.c.bf16 %v107_v58, %v107_v58 }
  0x19   :  { %v125_v0 = vunpack.c.l.bf16 %v109_v59 }
  0x1a   :  { %240 = vperm.xlu0 %690, %v186_v53   ;;  %v133_v60 = vadd.f32 %v628_v54, %v127_v57  ;;  %245 = vperm.xlu1 %691, %v187_v56   ;;  %v126_v2 = vunpack.c.l.bf16 %v110_v61 }
  0x1b   :  { %v131_v4 = vadd.f32 %v626_v62, %v125_v0 }
  0x1c   :  { %v136_v1 = vpack.c.bf16 %v133_v60, %v133_v60  ;;  %v132_v9 = vadd.f32 %v627_v63, %v126_v2 }
  0x1d   :  { %v134_v12 = vpack.c.bf16 %v131_v4, %v131_v4  ;;  %250 = vperm.xlu2 %692, %v188_v25  }
  0x1e   :  { %v152_v7 = vunpack.c.l.bf16 %v136_v1  ;;  %v135_v16 = vpack.c.bf16 %v132_v9, %v132_v9 }
  0x1f   :  { %v150_v19 = vunpack.c.l.bf16 %v134_v12 }
  0x20   :  { %v158_v15 = vadd.f32 %v631_v3, %v152_v7  ;;  %v151_v21 = vunpack.c.l.bf16 %v135_v16 }
  0x21   :  { %v156_v22 = vadd.f32 %v629_v17, %v150_v19 }
  0x22   :  { %v160_v20 = vpack.c.bf16 %v158_v15, %v158_v15  ;;  %255 = vperm.xlu0 %690, %v189_v11   ;;  %260 = vperm.xlu1 %691, %v190_v14   ;;  %v157_v24 = vadd.f32 %v630_v18, %v151_v21 }
  0x24   :  { %v340_v23 = vsel %vm338_vm2, %v160_v20, 0  ;;  %v159_v26 = vpack.c.bf16 %v157_v24, %v156_v22 }
  0x25   :  { %348 = vmatpush.bf16.msra.mxu0 %v340_v23  ;;  %680 = vmatpush.bf16.msra.mxu1 %v340_v23 }
  0x26   :  { %681 = vmatpush.bf16.msra.mxu2 %v340_v23  ;;  %682 = vmatpush.bf16.msra.mxu3 %v340_v23 }
  0x27   :  { %265 = vperm.xlu2 %692, %v191_v31  }
  0x29   :  { %349 = vmatpush.bf16.msra.mxu0 %v159_v26  ;;  %683 = vmatpush.bf16.msra.mxu1 %v159_v26 }
  0x2a   :  { %684 = vmatpush.bf16.msra.mxu2 %v159_v26  ;;  %685 = vmatpush.bf16.msra.mxu3 %v159_v26 }
  0x2b   :  { %270 = vperm.xlu0 %690, %v192_v28  }
  0x2c   :  { %664 = vmatmul.msk.bf16.vlgmr.msra.gmra.mxu0 %vm313_vm3, %v672_v13  ;;  %666 = vmatmul.msk.bf16.vlgmr.msra.gmra.mxu1 %vm313_vm3, %v674_v27 }
  0x2d   :  { %668 = vmatmul.msk.bf16.vlgmr.msra.gmra.mxu2 %vm313_vm3, %v676_v29  ;;  %670 = vmatmul.msk.bf16.vlgmr.msra.gmra.mxu3 %vm313_vm3, %v678_v30 }
  0x3c   :  { %665 = vmatmul.msk.bf16.gmra.mxu0 %vm313_vm3, %v673_v32  ;;  %667 = vmatmul.msk.bf16.gmra.mxu1 %vm313_vm3, %v675_v33 }
  0x3d   :  { %669 = vmatmul.msk.bf16.gmra.mxu2 %vm313_vm3, %v677_v34  ;;  %671 = vmatmul.msk.bf16.gmra.mxu3 %vm313_vm3, %v679_v35 }
  0x5f   :  { %v216_v39 = vpop.permute.xlu2 %215 }
  0x67   :  { %v221_v44 = vpop.permute.xlu2 %220 }
  0x6f   :  { %v236_v51 = vpop.permute.xlu2 %235 }
  0x74   :  { %v196_v36 = vpop.permute.xlu0 %195  ;;  %v206_v37 = vpop.permute.xlu1 %205 }
  0x77   :  { %v251_v58 = vpop.permute.xlu2 %250 }
  0x7c   :  { %v201_v38 = vpop.permute.xlu0 %200  ;;  %v211_v40 = vpop.permute.xlu1 %210 }
  0x81   :  { %v266_v13 = vpop.permute.xlu2 %265 }
  0x84   :  { %v226_v43 = vpop.permute.xlu0 %225  ;;  %v231_v49 = vpop.permute.xlu1 %230 }
  0x8c   :  { %v241_v50 = vpop.permute.xlu0 %240  ;;  %v246_v56 = vpop.permute.xlu1 %245 }
  0x94   :  { %v256_v57 = vpop.permute.xlu0 %255  ;;  %v261_v16 = vpop.permute.xlu1 %260 }
  0x9d   :  { %v271_v26 = vpop.permute.xlu0 %270 }
  0xa9   :  { %v351_v41 = vpop.f32.mrf.mxu0  ;;  %v361_v42 = vpop.f32.mrf.mxu1 }
  0xaa   :  { %v947_v63 = vadd.f32 %v351_v41, %v196_v36  ;;  %v949_v0 = vadd.f32 %v361_v42, %v216_v39 }
  0xac   :  { %v391_v15 = vmax.f32 %v947_v63, %v949_v0 }
  0xb0   :  { %v371_v45 = vpop.f32.mrf.mxu2  ;;  %v381_v46 = vpop.f32.mrf.mxu3 }
  0xb1   :  { %v353_v47 = vpop.f32.mrf.mxu0  ;;  %v363_v48 = vpop.f32.mrf.mxu1  ;;  %v957_v7 = vadd.f32 %v371_v45, %v236_v51  ;;  %v980_v27 = vadd.f32 %v381_v46, %v256_v57  ;;  %v1000_v46 = vadd.s32 96, %v819_v5  ;;  %v1015_v51 = vadd.s32 80, %v819_v5 }
  0xb2   :  { %v943_v61 = vadd.f32 %v353_v47, %v201_v38  ;;  %v945_v62 = vadd.f32 %v363_v48, %v221_v44  ;;  %v995_v44 = vadd.s32 64, %v819_v5  ;;  %v1003_v47 = vadd.s32 40, %v819_v5 }
  0xb3   :  { %v395_v19 = vmax.f32 %v391_v15, %v957_v7  ;;  %v1006_v48 = vadd.s32 72, %v819_v5 }
  0xb4   :  { %v392_v9 = vmax.f32 %v943_v61, %v945_v62 }
  0xb5   :  { %v399_v32 = vmax.f32 %v395_v19, %v980_v27 }
  0xb8   :  { %v373_v52 = vpop.f32.mrf.mxu2  ;;  %v383_v53 = vpop.f32.mrf.mxu3 }
  0xb9   :  { %v356_v54 = vpop.f32.mrf.mxu0  ;;  %v366_v55 = vpop.f32.mrf.mxu1  ;;  %v951_v3 = vadd.f32 %v373_v52, %v241_v50  ;;  %v973_v22 = vadd.f32 %v383_v53, %v261_v16  ;;  %v1012_v50 = vadd.s32 48, %v819_v5 }
  0xba   :  { %v953_v4 = vadd.f32 %v356_v54, %v206_v37  ;;  %v955_v6 = vadd.f32 %v366_v55, %v226_v43  ;;  %v992_v43 = vadd.s32 32, %v819_v5  ;;  %v1022_v54 = vadd.s32 112, %v819_v5 }
  0xbb   :  { %v396_v17 = vmax.f32 %v392_v9, %v951_v3  ;;  %v1025_v55 = vadd.s32 24, %v819_v5 }
  0xbc   :  { %v393_v18 = vmax.f32 %v953_v4, %v955_v6 }
  0xbd   :  { %v400_v28 = vmax.f32 %v396_v17, %v973_v22 }
  0xbf   :  { %v403_v35 = vmax.f32 %v399_v32, %v400_v28 }
  0xc0   :  { %v376_v59 = vpop.f32.mrf.mxu2  ;;  %v386_v60 = vpop.f32.mrf.mxu3 }
  0xc1   :  { %v358_v1 = vpop.f32.mrf.mxu0  ;;  %v368_v2 = vpop.f32.mrf.mxu1  ;;  %v961_v11 = vadd.f32 %v376_v59, %v246_v56  ;;  %v983_v29 = vadd.f32 %v386_v60, %v266_v13  ;;  %v1028_v56 = vadd.s32 56, %v819_v5 }
  0xc2   :  { %v963_v12 = vadd.f32 %v358_v1, %v211_v40  ;;  %v965_v14 = vadd.f32 %v368_v2, %v231_v49  ;;  %v1009_v49 = vadd.s32 104, %v819_v5  ;;  %v1040_v1 = vadd.s32 120, %v819_v5 }
  0xc3   :  { %v397_v23 = vmax.f32 %v393_v18, %v961_v11 }
  0xc4   :  { %v394_v24 = vmax.f32 %v963_v12, %v965_v14 }
  0xc5   :  { %v401_v33 = vmax.f32 %v397_v23, %v983_v29 }
  0xc8   :  { %v378_v20 = vpop.f32.mrf.mxu2  ;;  %v388_v21 = vpop.f32.mrf.mxu3 }
  0xc9   :  { %v978_v25 = vadd.f32 %v378_v20, %v251_v58  ;;  %v986_v31 = vadd.f32 %v388_v21, %v271_v26  ;;  %v1033_v58 = vadd.s32 88, %v819_v5 }
  0xcb   :  { %v398_v30 = vmax.f32 %v394_v24, %v978_v25 }
  0xcd   :  { %v402_v34 = vmax.f32 %v398_v30, %v986_v31 }
  0xcf   :  { %v404_v36 = vmax.f32 %v401_v33, %v402_v34 }
  0xd1   :  { %v405_v37 = vmax.f32 %v403_v35, %v404_v36 }
  0xd3   :  { %v406_v38 = vrot.slane %v405_v37, 4 }
  0xd5   :  { %v407_v39 = vmax.f32 %v405_v37, %v406_v38 }
  0xd7   :  { %v408_v40 = vrot.slane %v407_v39, 2 }
  0xd9   :  { %v409_v41 = vmax.f32 %v407_v39, %v408_v40 }
  0xdb   :  { %v410_v42 = vrot.slane %v409_v41, 1 }
  0xdd   :  { %v997_v45 = vmax.f32 %v409_v41, %v410_v42 }
  0xdf   :  { %v412_v52 = vsub.f32 %v947_v63, %v997_v45  ;;  %v413_v53 = vsub.f32 %v943_v61, %v997_v45  ;;  %v414_v57 = vsub.f32 %v953_v4, %v997_v45  ;;  %v415_v59 = vsub.f32 %v963_v12, %v997_v45 }
  0xe0   :  { %v416_v60 = vsub.f32 %v949_v0, %v997_v45  ;;  %v417_v2 = vsub.f32 %v945_v62, %v997_v45  ;;  %v418_v9 = vsub.f32 %v955_v6, %v997_v45  ;;  %v419_v15 = vsub.f32 %v965_v14, %v997_v45 }
  0xe1   :  { %v420_v16 = vsub.f32 %v957_v7, %v997_v45  ;;  %v421_v17 = vsub.f32 %v951_v3, %v997_v45  ;;  %v422_v18 = vsub.f32 %v961_v11, %v997_v45  ;;  %v428_v19 = vmul.f32 1.442695, %v412_v52 }
  0xe2   :  { %v430_v20 = vmul.f32 1.442695, %v413_v53  ;;  %v423_v21 = vsub.f32 %v978_v25, %v997_v45  ;;  %v424_v23 = vsub.f32 %v980_v27, %v997_v45  ;;  %v425_v24 = vsub.f32 %v973_v22, %v997_v45 }
  0xe3   :  { %v432_v26 = vmul.f32 1.442695, %v414_v57  ;;  %v426_v13 = vsub.f32 %v983_v29, %v997_v45  ;;  %v427_v28 = vsub.f32 %v986_v31, %v997_v45  ;;  %693 = vpow2.f32 %v428_v19 }
  0xe4   :  { %v434_v30 = vmul.f32 1.442695, %v415_v59  ;;  %695 = vpow2.f32 %v430_v20  ;;  %v436_v32 = vmul.f32 1.442695, %v416_v60  ;;  %v438_v33 = vmul.f32 1.442695, %v417_v2 }
  0xe5   :  { %vm510_vm4 = vcmp.eq.f32.partialorder %v947_v63, %v997_v45  ;;  %v440_v34 = vmul.f32 1.442695, %v418_v9  ;;  %v442_v35 = vmul.f32 1.442695, %v419_v15  ;;  %v444_v36 = vmul.f32 1.442695, %v420_v16 }
  0xe6   :  { %vm511_vm5 = vcmp.eq.f32.partialorder %v943_v61, %v997_v45  ;;  %697 = vpow2.f32 %v432_v26  ;;  %v446_v37 = vmul.f32 1.442695, %v421_v17  ;;  %v448_v38 = vmul.f32 1.442695, %v422_v18 }
  0xe7   :  { %v1068_v39 = vmul.f32 1.442695, %v423_v21  ;;  %699 = vpow2.f32 %v434_v30  ;;  %v1070_v40 = vmul.f32 1.442695, %v424_v23  ;;  %v1072_v41 = vmul.f32 1.442695, %v425_v24 }
  0xe8   :  { %vm512_vm6 = vcmp.eq.f32.partialorder %v953_v4, %v997_v45  ;;  %701 = vpow2.f32 %v436_v32  ;;  %vm513_vm7 = vcmp.eq.f32.partialorder %v963_v12, %v997_v45  ;;  %vm514_vm8 = vcmp.eq.f32.partialorder %v949_v0, %v997_v45 }
  0xe9   :  { %vm515_vm9 = vcmp.eq.f32.partialorder %v945_v62, %v997_v45  ;;  %v1082_v42 = vpop.eup %693  ;;  %703 = vpow2.f32 %v438_v33  ;;  %vm516_vm10 = vcmp.eq.f32.partialorder %v955_v6, %v997_v45  ;;  %vm517_vm11 = vcmp.eq.f32.partialorder %v965_v14, %v997_v45 }
  0xea   :  { %vm518_vm12 = vcmp.eq.f32.partialorder %v957_v7, %v997_v45  ;;  %v696_v52 = vpop.eup %695  ;;  %705 = vpow2.f32 %v440_v34  ;;  %vm519_vm13 = vcmp.eq.f32.partialorder %v951_v3, %v997_v45  ;;  %vm520_vm14 = vcmp.eq.f32.partialorder %v961_v11, %v997_v45 }
  0xeb   :  { %vm521_vm15 = vcmp.eq.f32.partialorder %v978_v25, %v997_v45  ;;  %707 = vpow2.f32 %v442_v35  ;;  %v460_v53 = vadd.f32 %v696_v52, %v1082_v42  ;;  %vm522_vm0 = vcmp.eq.f32.partialorder %v980_v27, %v997_v45 }
  0xec   :  { %vm523_vm1 = vcmp.eq.f32.partialorder %v973_v22, %v997_v45  ;;  %v698_v57 = vpop.eup %697  ;;  %709 = vpow2.f32 %v444_v36  ;;  %vm524_vm2 = vcmp.eq.f32.partialorder %v983_v29, %v997_v45  ;;  %vm525_vm3 = vcmp.eq.f32.partialorder %v986_v31, %v997_v45 }
  0xed   :  { %v526_v59 = vsel %vm510_vm4, %v819_v5, 128  ;;  %v700_v60 = vpop.eup %699  ;;  %711 = vpow2.f32 %v446_v37  ;;  %v461_v2 = vadd.f32 %v698_v57, %v460_v53  ;;  %v527_v9 = vsel %vm511_vm5, %v828_v10, 128 }
  0xee   :  { %v528_v15 = vsel %vm512_vm6, %v824_v8, 128  ;;  %v702_v16 = vpop.eup %701  ;;  %713 = vpow2.f32 %v448_v38  ;;  %v529_v5 = vsel %vm513_vm7, %v1025_v55, 128  ;;  %v530_v63 = vsel %vm514_vm8, %v992_v43, 128 }
  0xef   :  { %v531_v10 = vsel %vm515_vm9, %v1003_v47, 128  ;;  %v704_v61 = vpop.eup %703  ;;  %v462_v4 = vadd.f32 %v700_v60, %v461_v2  ;;  %v532_v8 = vsel %vm516_vm10, %v1012_v50, 128  ;;  %v533_v12 = vsel %vm517_vm11, %v1028_v56, 128 }
  0xf0   :  { %v534_v0 = vsel %vm518_vm12, %v995_v44, 128  ;;  %v706_v43 = vpop.eup %705  ;;  %v535_v62 = vsel %vm519_vm13, %v1006_v48, 128  ;;  %v536_v6 = vsel %vm520_vm14, %v1015_v51, 128  ;;  %v537_v14 = vsel %vm521_vm15, %v1033_v58, 128 }
  0xf1   :  { %v538_v7 = vsel %vm522_vm0, %v1000_v46, 128  ;;  %v708_v44 = vpop.eup %707  ;;  %v463_v47 = vadd.f32 %v702_v16, %v462_v4  ;;  %v539_v3 = vsel %vm523_vm1, %v1009_v49, 128  ;;  %v540_v11 = vsel %vm524_vm2, %v1022_v54, 128 }
  0xf2   :  { %vm542_vm4 = vcmp.lt.s32.totalorder %v526_v59, %v530_v63  ;;  %v710_v25 = vpop.eup %709  ;;  %v541_v27 = vsel %vm525_vm3, %v1040_v1, 128  ;;  %vm544_vm5 = vcmp.lt.s32.totalorder %v527_v9, %v531_v10  ;;  %vm546_vm6 = vcmp.lt.s32.totalorder %v528_v15, %v532_v8 }
  0xf3   :  { %v543_v46 = vsel %vm542_vm4, %v526_v59, %v530_v63  ;;  %v712_v48 = vpop.eup %711  ;;  %v464_v50 = vadd.f32 %v704_v61, %v463_v47  ;;  %v545_v51 = vsel %vm544_vm5, %v527_v9, %v531_v10  ;;  %v547_v22 = vsel %vm546_vm6, %v528_v15, %v532_v8 }
  0xf4   :  { %vm548_vm7 = vcmp.lt.s32.totalorder %v529_v5, %v533_v12  ;;  %v714_v49 = vpop.eup %713  ;;  %vm550_vm8 = vcmp.lt.s32.totalorder %v543_v46, %v534_v0  ;;  %vm552_vm9 = vcmp.lt.s32.totalorder %v545_v51, %v535_v62  ;;  %vm554_vm10 = vcmp.lt.s32.totalorder %v547_v22, %v536_v6 }
  0xf5   :  { %v549_v55 = vsel %vm548_vm7, %v529_v5, %v533_v12  ;;  %v465_v54 = vadd.f32 %v706_v43, %v464_v50  ;;  %v551_v56 = vsel %vm550_vm8, %v543_v46, %v534_v0  ;;  %v553_v58 = vsel %vm552_vm9, %v545_v51, %v535_v62 }
  0xf6   :  { %v555_v17 = vsel %vm554_vm10, %v547_v22, %v536_v6  ;;  %vm556_vm11 = vcmp.lt.s32.totalorder %v549_v55, %v537_v14  ;;  %vm558_vm12 = vcmp.lt.s32.totalorder %v551_v56, %v538_v7  ;;  %vm560_vm13 = vcmp.lt.s32.totalorder %v553_v58, %v539_v3 }
  0xf7   :  { %vm562_vm14 = vcmp.lt.s32.totalorder %v555_v17, %v540_v11  ;;  %v466_v1 = vadd.f32 %v708_v44, %v465_v54  ;;  %v557_v18 = vsel %vm556_vm11, %v549_v55, %v537_v14  ;;  %v559_v19 = vsel %vm558_vm12, %v551_v56, %v538_v7 }
  0xf8   :  { %v561_v20 = vsel %vm560_vm13, %v553_v58, %v539_v3  ;;  %715 = vpow2.f32 %v1068_v39  ;;  %v563_v21 = vsel %vm562_vm14, %v555_v17, %v540_v11  ;;  %vm564_vm15 = vcmp.lt.s32.totalorder %v557_v18, %v541_v27 }
  0xf9   :  { %vm566_vm0 = vcmp.lt.s32.totalorder %v559_v19, %v561_v20  ;;  %v467_v23 = vadd.f32 %v710_v25, %v466_v1  ;;  %v565_v24 = vsel %vm564_vm15, %v557_v18, %v541_v27  ;;  %717 = vpow2.f32 %v1070_v40 }
  0xfa   :  { %v567_v26 = vsel %vm566_vm0, %v559_v19, %v561_v20  ;;  %v456_v30 = vmul.f32 1.442695, %v426_v13  ;;  %vm568_vm1 = vcmp.lt.s32.totalorder %v563_v21, %v565_v24  ;;  %719 = vpow2.f32 %v1072_v41 }
  0xfb   :  { %v468_v32 = vadd.f32 %v712_v48, %v467_v23  ;;  %v569_v33 = vsel %vm568_vm1, %v563_v21, %v565_v24  ;;  %v458_v34 = vmul.f32 1.442695, %v427_v28 }
  0xfc   :  { %vm570_vm2 = vcmp.lt.s32.totalorder %v567_v26, %v569_v33  ;;  %721 = vpow2.f32 %v456_v30 }
  0xfd   :  { %v469_v35 = vadd.f32 %v714_v49, %v468_v32  ;;  %v571_v36 = vsel %vm570_vm2, %v567_v26, %v569_v33  ;;  %723 = vpow2.f32 %v458_v34 }
  0xfe   :  { %v716_v37 = vpop.eup %715  ;;  %v572_v38 = vrot.slane %v571_v36, 4 }
  0xff   :  { %v470_v39 = vadd.f32 %v716_v37, %v469_v35  ;;  %v718_v40 = vpop.eup %717 }
 0x100   :  { %vm573_vm3 = vcmp.lt.s32.totalorder %v571_v36, %v572_v38  ;;  %v720_v52 = vpop.eup %719 }
 0x101   :  { %v471_v29 = vadd.f32 %v718_v40, %v470_v39  ;;  %v574_v13 = vsel %vm573_vm3, %v571_v36, %v572_v38 }
 0x102   :  { %v575_v53 = vrot.slane %v574_v13, 2  ;;  %v722_v41 = vpop.eup %721 }
 0x103   :  { %v472_v57 = vadd.f32 %v720_v52, %v471_v29  ;;  %v724_v45 = vpop.eup %723 }
 0x104   :  { %vm576_vm4 = vcmp.lt.s32.totalorder %v574_v13, %v575_v53 }
 0x105   :  { %v473_v59 = vadd.f32 %v722_v41, %v472_v57  ;;  %v577_v31 = vsel %vm576_vm4, %v574_v13, %v575_v53 }
 0x106   :  { %v578_v28 = vrot.slane %v577_v31, 1 }
 0x107   :  { %v474_v60 = vadd.f32 %v724_v45, %v473_v59 }
 0x108   :  { %vm579_vm5 = vcmp.lt.s32.totalorder %v577_v31, %v578_v28 }
 0x109   :  { %v475_v2 = vrot.slane %v474_v60, 4  ;;  %v580_v9 = vsel %vm579_vm5, %v577_v31, %v578_v28 }
 0x10a   :  { %581 = vst [vmem:[#allocation4] sm:$0x1] %v580_v9 }
 0x10b   :  { %v476_v15 = vadd.f32 %v475_v2, %v474_v60  ;;  %603 = dma.vmem_to_hbm [thread:$0]  %s599_s2, 16, %s601_s13, [#allocation5]  }
 0x10d   :  { %v477_v16 = vrot.slane %v476_v15, 2 }
 0x10f   :  { %v478_v5 = vadd.f32 %v477_v16, %v476_v15 }
 0x111   :  { %v479_v63 = vrot.slane %v478_v5, 1 }
 0x113   :  { %v480_v10 = vadd.f32 %v479_v63, %v478_v5 }
 0x115   :  { %725 = vrcp.f32 %v480_v10  ;;  %v492_v12 = vand.u32 2147483648, %v480_v10  ;;  %v490_v43 = vand.u32 2147483647, %v480_v10  ;;  %vm486_vm7 = vweird.f32 %v480_v10 }
 0x117   :  { %v493_v6 = vor.u32 1.1754944e-38, %v492_v12  ;;  %vm491_vm9 = vcmp.eq.f32.partialorder %v490_v43, 8.507059e+37 }
 0x11b   :  { %v726_v61 = vpop.eup %725 }
 0x11c   :  { %v482_v4 = vmul.f32 %v726_v61, %v480_v10  ;;  %vm487_vm6 = vweird.f32 %v726_v61 }
 0x11d   :  { %vm488_vm8 = vmor %vm486_vm7, %vm487_vm6 }
 0x11e   :  { %v483_v8 = vsub.f32 1.0, %v482_v4 }
 0x120   :  { %v484_v0 = vmul.f32 %v726_v61, %v483_v8 }
 0x122   :  { %v485_v62 = vadd.f32 %v726_v61, %v484_v0 }
 0x124   :  { %v489_v14 = vsel %vm488_vm8, %v726_v61, %v485_v62 }
 0x125   :  { %v494_v7 = vsel %vm491_vm9, %v493_v6, %v489_v14 }
 0x126   :  { %v495_v44 = vmul.f32 %v1082_v42, %v494_v7 }
 0x128   :  { %496 = vst [vmem:[#allocation2] sm:$0x3] %v495_v44 }
 0x129   :  { %592 = dma.vmem_to_hbm [thread:$0]  %s588_s14, 32, %s590_s17, [#allocation3]  }
 0x12a   :  { %775 = dma.done.wait [#allocation3], 32  }
 0x12b   :  { %776 = vsyncadd [#allocation3], 4294967264 }
 0x12c   :  { %777 = dma.done.wait [#allocation5], 16  }
 0x12d   :  { %778 = vsyncadd [#allocation5], 4294967280 }
 0x12e   :  { %612 = vsyncpa [#allocation3], 1 }
 0x12f   :  { %613 = vsyncpa [#allocation5], 1 }

</bundles_post_ra>
